<compile_context>
chip_gen: v7x
topology: tpu7x:2x2x1
jax: 0.10.0
libtpu: 0.0.40
codegen_flags: <defaults>
</compile_context>

<pallas_src>
import math

import jax
import jax.numpy as jnp
from jax.experimental import pallas as pl
from jax.experimental.pallas import tpu as pltpu


def _round_up(a: int, m: int) -> int:
    return (a + m - 1) // m * m


def _tile_budget_bytes() -> int:
    """Per-buffer output-tile budget (double-buffered by the pipeline)."""
    cap = 64 << 20
    try:
        cap = getattr(pltpu.get_tpu_info(), "vmem_capacity_bytes", cap)
    except Exception:  # interpret mode / older runtimes
        pass
    # 4 MiB tile -> 8 MiB double-buffered: fits v5e's 16 MiB scoped default
    # and leaves plenty of headroom on v6e (128 MiB) / v7x (64 MiB).
    return max(1 << 20, min(4 << 20, cap // 16))


def _float_pos_emb_kernel(x_ref, w_ref, ph_ref, o_ref):
    # x_ref : (T, k)  positions, k original rows folded per output row
    # w_ref : (k, L)  block-diagonal frequency table, f32, resident
    # ph_ref: (1, L)  phase row (0 for cos half, -pi/2 for sin half), f32
    # o_ref : (T, L)  L = k * output_dim (128 lanes when output_dim | 128)
    x = x_ref[...].astype(jnp.float32)                # (T, k)
    w = w_ref[...]                                    # (k, L)
    ang = x[:, 0:1] * w[0:1, :] + ph_ref[...]         # (T, L), f32
    for j in range(1, x.shape[1]):                    # static unroll, cheap FMAs
        ang = ang + x[:, j:j+1] * w[j:j+1, :]
    # Single phase-shifted cosine = fused cos/sin halves; one lane-dense store.
    o_ref[...] = jnp.cos(ang).astype(o_ref.dtype)


def _reference(x: jax.Array, output_dim: int, max_positions: int = 10000):
    half = output_dim // 2
    freqs = jnp.arange(half, dtype=jnp.float32) / (half - 1)
    freqs = (1.0 / max_positions) ** freqs
    ang = jnp.outer(x, freqs.astype(x.dtype))
    return jnp.concatenate([jnp.cos(ang), jnp.sin(ang)], axis=1)


def float_positional_embedding(x: jax.Array, output_dim: int,
                               max_positions: int = 10000, *,
                               force_pallas: bool = False) -> jax.Array:
    """x: (N,) float positions -> (N, output_dim) = [cos | sin] embedding."""
    assert x.ndim == 1, "x.ger(freqs) in torch requires a 1-D input"
    assert output_dim % 2 == 0, "output_dim must be even (cos/sin halves)"
    half = output_dim // 2
    assert half > 1, "output_dim // 2 must be > 1 (freqs divides by half - 1)"
    n = x.shape[0]

    # Tiny inputs: plain XLA fusion beats any kernel-launch/grid overhead.
    if not force_pallas and n * output_dim < 100_000:
        return _reference(x, output_dim, max_positions)

    # Fold k original rows per output row so the last dim is 128 lanes.
    k = 128 // output_dim if (output_dim < 128 and 128 % output_dim == 0) else 1
    lane = k * output_dim

    # Frequency / phase tables — kept float32 regardless of x.dtype.
    freqs = (1.0 / max_positions) ** (
        jnp.arange(half, dtype=jnp.float32) / (half - 1))
    f_row = jnp.concatenate([freqs, freqs])                          # (D,)
    ph_row = jnp.concatenate(
        [jnp.zeros((half,), jnp.float32),
         jnp.full((half,), -0.5 * math.pi, jnp.float32)])            # (D,)
    w = jnp.kron(jnp.eye(k, dtype=jnp.float32), f_row[None, :])      # (k, lane)
    ph = jnp.tile(ph_row, (k,))[None, :]                             # (1, lane)

    # Fold x into (rows, k); only a <= k-1 element pad when k does not divide N.
    n_k = _round_up(n, k)
    x_pad = x if n_k == n else jnp.pad(x, (0, n_k - n))
    rows = n_k // k
    x2 = x_pad.reshape(rows, k)

    # Row tiling: big tiles (per-grid-step overhead ~600 cycles), VMEM-clamped,
    # and capped so the grid has >= 4 steps (both v7x TensorCores get work).
    itemsize = jnp.dtype(x.dtype).itemsize
    row_bytes = lane * itemsize
    budget = _tile_budget_bytes()
    tile_rows = max(8, min(budget // row_bytes, 8192) // 8 * 8)
    tile_rows = min(tile_rows, max(8, _round_up(pl.cdiv(rows, 4), 8)))
    grid = (pl.cdiv(rows, tile_rows),)   # ragged last block handled by Pallas

    cost = pl.CostEstimate(
        flops=2 * k * rows * lane,
        transcendentals=rows * lane,
        bytes_accessed=rows * lane * itemsize + n_k * itemsize + (k + 1) * lane * 4,
    )

    out = pl.pallas_call(
        _float_pos_emb_kernel,
        out_shape=jax.ShapeDtypeStruct((rows, lane), x.dtype),
        grid=grid,
        in_specs=[
            pl.BlockSpec((tile_rows, k), lambda i: (i, 0)),   # row tile of x
            pl.BlockSpec((k, lane), lambda i: (0, 0)),        # freq table, resident
            pl.BlockSpec((1, lane), lambda i: (0, 0)),        # phase row, resident
        ],
        out_specs=pl.BlockSpec((tile_rows, lane), lambda i: (i, 0)),
        compiler_params=pltpu.CompilerParams(
            dimension_semantics=("parallel",)),
        cost_estimate=cost,
    )(x2, w, ph)

    if k > 1:
        out = out.reshape(n_k, output_dim)
    return out[:n] if n_k != n else out


if __name__ == "__main__":
    key = jax.random.PRNGKey(0)
    # Tolerances: the sin half is computed as cos(ang - pi/2); the -pi/2 shift
    # costs <= 0.5 ulp of the (possibly ~1e3 rad) angle, i.e. a few e-5 abs.
    ATOL, RTOL = 2e-4, 2e-4

    # Case 1: module-default tiny shape (N=8 timesteps), D=64 -> folded k=2.
    D = 64
    x_small = jax.random.uniform(key, (8,), dtype=jnp.float32) * 1000.0
    out_s = jax.block_until_ready(
        float_positional_embedding(x_small, D, force_pallas=True))
    ref_s = _reference(x_small, D)
    assert out_s.shape == (8, D) and out_s.dtype == x_small.dtype, out_s.shape
    assert jnp.allclose(out_s, ref_s, atol=ATOL, rtol=RTOL), "small-case mismatch"

    # Case 2: larger, non-multiple-of-tile N -> ragged last block, grid=4.
    x_big = jax.random.uniform(key, (1000,), dtype=jnp.float32) * 1000.0
    out_b = jax.block_until_ready(
        float_positional_embedding(x_big, D, force_pallas=True))
    ref_b = _reference(x_big, D)
    assert out_b.shape == (1000, D), out_b.shape
    assert jnp.allclose(out_b, ref_b, atol=ATOL, rtol=RTOL), "big-case mismatch"

    # Case 3: wide embedding (D=256 >= 128) -> unfolded k=1 path.
    DW = 256
    x_wide = jax.random.uniform(key, (64,), dtype=jnp.float32) * 1000.0
    out_w = jax.block_until_ready(
        float_positional_embedding(x_wide, DW, force_pallas=True))
    ref_w = _reference(x_wide, DW)
    assert out_w.shape == (64, DW), out_w.shape
    assert jnp.allclose(out_w, ref_w, atol=ATOL, rtol=RTOL), "wide-case mismatch"

    # Auto-dispatch path (tiny N goes through plain XLA fusion).
    out_auto = jax.block_until_ready(float_positional_embedding(x_small, D))
    assert jnp.allclose(out_auto, ref_s, atol=ATOL, rtol=RTOL), "auto-path mismatch"

    print("KERNEL_OK")
</pallas_src>

<mosaic_0001>
module attributes {stable_mosaic.version = 11 : i64} {
  func.func @_float_pos_emb_kernel(%arg0: i32, %arg1: memref<8x2xf32, #tpu.memory_space<vmem>>, %arg2: memref<2x128xf32, #tpu.memory_space<vmem>>, %arg3: memref<1x128xf32, #tpu.memory_space<vmem>>, %arg4: memref<8x128xf32, #tpu.memory_space<vmem>>) attributes {dimension_semantics = [#tpu.dimension_semantics<parallel>], iteration_bounds = array<i64: 1>, scalar_prefetch = 0 : i64, scratch_operands = 0 : i64, tpu.core_type = #tpu.core_type<tc>, window_params = [{transform_indices = @transform_0, window_bounds = array<i64: 8, 2>}, {pipeline_mode = #tpu.pipeline_mode<synchronous>, transform_indices = @transform_1, window_bounds = array<i64: 2, 128>}, {pipeline_mode = #tpu.pipeline_mode<synchronous>, transform_indices = @transform_2, window_bounds = array<i64: 1, 128>}, {transform_indices = @transform_3, window_bounds = array<i64: 8, 128>}]} {
    %c0 = arith.constant 0 : index
    %c0_0 = arith.constant 0 : index
    %0 = vector.load %arg1[%c0, %c0_0] : memref<8x2xf32, #tpu.memory_space<vmem>>, vector<8x2xf32>
    %c0_1 = arith.constant 0 : index
    %c0_2 = arith.constant 0 : index
    %1 = vector.load %arg2[%c0_1, %c0_2] : memref<2x128xf32, #tpu.memory_space<vmem>>, vector<2x128xf32>
    %2 = vector.extract_strided_slice %0 {offsets = [0, 0], sizes = [8, 1], strides = [1, 1]} : vector<8x2xf32> to vector<8x1xf32>
    %3 = vector.extract_strided_slice %1 {offsets = [0, 0], sizes = [1, 128], strides = [1, 1]} : vector<2x128xf32> to vector<1x128xf32>
    %4 = vector.broadcast %2 : vector<8x1xf32> to vector<8x128xf32>
    %5 = vector.broadcast %3 : vector<1x128xf32> to vector<8x128xf32>
    %6 = arith.mulf %4, %5 : vector<8x128xf32>
    %c0_3 = arith.constant 0 : index
    %c0_4 = arith.constant 0 : index
    %7 = vector.load %arg3[%c0_3, %c0_4] : memref<1x128xf32, #tpu.memory_space<vmem>>, vector<1x128xf32>
    %8 = vector.broadcast %7 : vector<1x128xf32> to vector<8x128xf32>
    %9 = arith.addf %6, %8 : vector<8x128xf32>
    %10 = vector.extract_strided_slice %0 {offsets = [0, 1], sizes = [8, 1], strides = [1, 1]} : vector<8x2xf32> to vector<8x1xf32>
    %11 = vector.extract_strided_slice %1 {offsets = [1, 0], sizes = [1, 128], strides = [1, 1]} : vector<2x128xf32> to vector<1x128xf32>
    %12 = vector.broadcast %10 : vector<8x1xf32> to vector<8x128xf32>
    %13 = vector.broadcast %11 : vector<1x128xf32> to vector<8x128xf32>
    %14 = arith.mulf %12, %13 : vector<8x128xf32>
    %15 = arith.addf %9, %14 : vector<8x128xf32>
    %16 = math.cos %15 : vector<8x128xf32>
    %c0_5 = arith.constant 0 : index
    %c0_6 = arith.constant 0 : index
    %17 = vector.load %arg4[%c0_5, %c0_6] : memref<8x128xf32, #tpu.memory_space<vmem>>, vector<8x128xf32>
    tpu.vector_store %arg4[%c0_5, %c0_6], %16 {strides = array<i32>} : memref<8x128xf32, #tpu.memory_space<vmem>>, vector<8x128xf32>,
    return
  }
  func.func @transform_0(%arg0: i32) -> (i32, i32) {
    %c0_i32 = arith.constant 0 : i32
    %c0_i32_0 = arith.constant 0 : i32
    return %arg0, %c0_i32 : i32, i32
  }
  func.func @transform_1(%arg0: i32) -> (i32, i32) {
    %c0_i32 = arith.constant 0 : i32
    %c0_i32_0 = arith.constant 0 : i32
    %c0_i32_1 = arith.constant 0 : i32
    return %c0_i32, %c0_i32_0 : i32, i32
  }
  func.func @transform_2(%arg0: i32) -> (i32, i32) {
    %c0_i32 = arith.constant 0 : i32
    %c0_i32_0 = arith.constant 0 : i32
    %c0_i32_1 = arith.constant 0 : i32
    return %c0_i32, %c0_i32_0 : i32, i32
  }
  func.func @transform_3(%arg0: i32) -> (i32, i32) {
    %c0_i32 = arith.constant 0 : i32
    %c0_i32_0 = arith.constant 0 : i32
    return %arg0, %c0_i32 : i32, i32
  }
}

</mosaic_0001>

<bundles_post_ra>
// kernel: tpu_custom_call.1
= control target key start
LH: loop header
LB: loop body
LE: loop exit
PB: predicated region body
PF: predicated region fallthrough
CT: control target
= control target key end

     0   :  { %v215_v1 = vmov 0   ;;  %s288_s0 = inlined_call_operand.vmem [shape: f32[4,2], index: 0, kind: input, shape index: {}]   ;;  %s289_s1 = inlined_call_operand.vmem [shape: f32[2,128], index: 1, kind: input, shape index: {}]   ;;  %s290_s2 = inlined_call_operand.vmem [shape: f32[1,128], index: 2, kind: input, shape index: {}]   ;;  %s291_s3 = inlined_call_operand.hbm [shape: f32[4,128], index: 3, kind: output, shape index: {}]  }
   0x1   :  { %v15_v0 = vld [vmem:[%s288_s0] sm:$0xff]  ;;  %185 = vset.pattern.permute.xlu0 %v215_v1 }
   0x2   :  { %8 = vsyncpa [#allocation3], 0  ;;  %19 = vperm.xlu0 %185, %v15_v0   ;;  %v216_v2 = vmov 1   ;;  %v22_v3 = vlaneseq  ;;  %v16_v6 = vld [vmem:[%s289_s1] sm:$0x3] }
   0x3   :  { %v165_v12 = vld [vmem:[%s290_s2] ss:$0 sm:$0xff]  ;;  %v217_v27 = vmov 683565275   ;;  %v218_v29 = vmov 2475754826  }
   0x4   :  { %v23_v4 = vshrl.u32 %v22_v3, 7  ;;  %v219_v32 = vmov 2131351028   ;;  %v220_v35 = vmov 2102212464  }
   0x5   :  { %v221_v38 = vmov 920167782   ;;  %v222_v41 = vmov 1326507024  }
   0x6   :  { %186 = vset.pattern.permute.xlu0 %v216_v2  ;;  %v24_v5 = vsub.s32 0, %v23_v4  ;;  %v41_v8 = vsub.s32 1, %v23_v4 }
   0x7   :  { %36 = vperm.xlu0 %186, %v15_v0  }
   0x8   :  { %v25_v7 = vrot.slane %v16_v6, %v24_v5  ;;  %v42_v11 = vrot.slane %v16_v6, %v41_v8 }
  0x81   :  { %v20_v9 = vpop.permute.xlu0 %19 }
  0x82   :  { %v26_v10 = vmul.f32 %v25_v7, %v20_v9 }
  0x84   :  { %v34_v14 = vadd.f32 %v165_v12, %v26_v10 }
  0x86   :  { %v37_v13 = vpop.permute.xlu0 %36 }
  0x87   :  { %v43_v15 = vmul.f32 %v42_v11, %v37_v13 }
  0x89   :  { %v255_v16 = vadd.f32 %v43_v15, %v34_v14 }
  0x8b   :  { %v48_v17 = vand.u32 2139095040, %v255_v16  ;;  %v45_v21 = vand.u32 2147483647, %v255_v16  ;;  %vm47_vm7 = vcmp.lt.s32.totalorder %v255_v16, 0  ;;  %vm137_vm12 = vweird.f32 %v255_v16 }
  0x8d   :  { %v49_v18 = vshrl.u32 %v48_v17, 23  ;;  %v52_v24 = vand.u32 8388607, %v45_v21  ;;  %vm46_vm8 = vcmp.le.f32.partialorder %v45_v21, 0.7853982 }
  0x8f   :  { %v166_v19 = vadd.s32 4294967169, %v49_v18  ;;  %v53_v43 = vor.u32 8388608, %v52_v24 }
  0x91   :  { %v55_v20 = vadd.s32 1, %v166_v19  ;;  %v93_v57 = vshll.u32 %v53_v43, 8 }
  0x93   :  { %vm56_vm0 = vcmp.gt.s32.totalorder %v55_v20, 0 }
  0x94   :  { %v57_v22 = vsel %vm56_vm0, %v55_v20, 0 }
  0x95   :  { %v59_v23 = vand.u32 31, %v57_v22  ;;  %v58_v26 = vshrl.u32 %v57_v22, 5 }
  0x97   :  { %v60_v25 = vsub.s32 32, %v59_v23  ;;  %v62_v28 = vshll.u32 %v217_v27, %v59_v23  ;;  %v65_v30 = vshll.u32 %v218_v29, %v59_v23  ;;  %v68_v34 = vshll.u32 %v219_v32, %v59_v23 }
  0x98   :  { %v71_v37 = vshll.u32 %v220_v35, %v59_v23  ;;  %v74_v40 = vshll.u32 %v221_v38, %v59_v23  ;;  %vm77_vm1 = vcmp.lt.s32.totalorder %v58_v26, 1  ;;  %vm80_vm2 = vcmp.lt.s32.totalorder %v58_v26, 4 }
  0x99   :  { %v63_v31 = vshrl.u32 %v218_v29, %v60_v25  ;;  %v66_v33 = vshrl.u32 %v219_v32, %v60_v25  ;;  %v69_v36 = vshrl.u32 %v220_v35, %v60_v25  ;;  %v72_v39 = vshrl.u32 %v221_v38, %v60_v25 }
  0x9a   :  { %v75_v42 = vshrl.u32 %v222_v41, %v60_v25  ;;  %v61_v52 = vshrl.u32 %v217_v27, %v60_v25  ;;  %vm79_vm3 = vcmp.lt.s32.totalorder %v58_v26, 3  ;;  %vm78_vm4 = vcmp.lt.s32.totalorder %v58_v26, 2 }
  0x9b   :  { %v64_v44 = vor.u32 %v63_v31, %v62_v28  ;;  %v67_v45 = vor.u32 %v66_v33, %v65_v30  ;;  %v70_v46 = vor.u32 %v69_v36, %v68_v34  ;;  %v73_v47 = vor.u32 %v72_v39, %v71_v37 }
  0x9c   :  { %v76_v48 = vor.u32 %v75_v42, %v74_v40 }
  0x9d   :  { %v82_v49 = vsel %vm80_vm2, %v70_v46, 2102212464  ;;  %v85_v50 = vsel %vm77_vm1, %v64_v44, %v67_v45  ;;  %v89_v51 = vsel %vm77_vm1, %v67_v45, %v70_v46  ;;  %v86_v53 = vsel %vm80_vm2, %v73_v47, 920167782 }
  0x9e   :  { %v90_v54 = vsel %vm80_vm2, %v76_v48, 1326507024  ;;  %v87_v55 = vsel %vm79_vm3, %v70_v46, %v86_v53  ;;  %v81_v58 = vsel %vm77_vm1, %v61_v52, %v64_v44  ;;  %v83_v59 = vsel %vm79_vm3, %v67_v45, %v82_v49 }
  0x9f   :  { %v91_v56 = vsel %vm79_vm3, %v73_v47, %v90_v54  ;;  %v88_v60 = vsel %vm78_vm4, %v85_v50, %v87_v55  ;;  %v84_v2 = vsel %vm78_vm4, %v81_v58, %v83_v59 }
  0xa0   :  { %v92_v61 = vsel %vm78_vm4, %v89_v51, %v91_v56  ;;  %v264_v0 = vmul.u32.u64.low %v93_v57, %v88_v60  ;;  %v265_v1 = vmul.u32.u64.high %v93_v57, %v88_v60, %v264_v0  ;;  %v100_v4 = vmul.u32 %v93_v57, %v84_v2 }
  0xa1   :  { %v261_v62 = vmul.u32.u64.low %v93_v57, %v92_v61  ;;  %v262_v63 = vmul.u32.u64.high %v93_v57, %v92_v61, %v261_v62 }
  0xa2   :  { %v103_v3 = vadd.s32 1, %v265_v1 }
  0xa3   :  { %vm102_vm5 = vc.u32 %v262_v63, %v264_v0  ;;  %v101_v17 = vadd.s32 %v264_v0, %v262_v63 }
  0xa4   :  { %v104_v5 = vsel %vm102_vm5, %v103_v3, %v265_v1 }
  0xa5   :  { %v105_v6 = vadd.s32 %v104_v5, %v100_v4 }
  0xa7   :  { %v106_v7 = vadd.s32 536870912, %v105_v6 }
  0xa9   :  { %v107_v8 = vshrl.u32 %v106_v7, 30 }
  0xab   :  { %v108_v9 = vshll.u32 %v107_v8, 30  ;;  %v131_v32 = vsub.s32 4, %v107_v8 }
  0xad   :  { %v109_v10 = vsub.s32 %v105_v6, %v108_v9  ;;  %v132_v34 = vsel %vm47_vm7, %v131_v32, %v107_v8 }
  0xae   :  { %v134_v35 = vsel %vm46_vm8, 0, %v132_v34 }
  0xaf   :  { %v111_v11 = vsub.s32 0, %v109_v10  ;;  %v138_v36 = vand.u32 3, %v134_v35 }
  0xb1   :  { %v167_v12 = vmin.u32 %v111_v11, %v109_v10  ;;  %vm143_vm9 = vcmp.eq.s32.totalorder %v138_v36, 2  ;;  %vm140_vm10 = vcmp.eq.s32.totalorder %v138_v36, 0  ;;  %vm139_vm11 = vcmp.lt.s32.totalorder %v138_v36, 2 }
  0xb3   :  { %v113_v13 = vclz %v167_v12 }
  0xb5   :  { %v168_v14 = vadd.s32 4294967294, %v113_v13 }
  0xb7   :  { %vm169_vm6 = vcmp.lt.s32.totalorder %v168_v14, 0 }
  0xb8   :  { %v116_v15 = vsel %vm169_vm6, 0, %v168_v14 }
  0xb9   :  { %v117_v18 = vsub.s32 32, %v116_v15  ;;  %v121_v19 = vsub.s32 4294967266, %v116_v15  ;;  %v118_v20 = vshll.u32 %v109_v10, %v116_v15 }
  0xbb   :  { %v119_v22 = vshrl.u32 %v101_v17, %v117_v18  ;;  %v122_v23 = vadd.s32 127, %v121_v19 }
  0xbd   :  { %v120_v24 = vor.u32 %v119_v22, %v118_v20  ;;  %v123_v25 = vshll.u32 %v122_v23, 23 }
  0xbf   :  { %v124_v26 = vor.u32 4788187, %v123_v25  ;;  %v127_v28 = vcvt.s32.f32 %v120_v24 }
  0xc1   :  { %v125_v27 = vand.u32 2147483647, %v124_v26 }
  0xc3   :  { %v128_v29 = vmul.f32 %v127_v28, %v125_v27 }
  0xc5   :  { %v129_v30 = vxor.u32 2147483648, %v128_v29 }
  0xc7   :  { %v130_v31 = vsel %vm47_vm7, %v129_v30, %v128_v29 }
  0xc8   :  { %v133_v33 = vsel %vm46_vm8, %v255_v16, %v130_v31 }
  0xc9   :  { %187 = vcosq.f32 %v133_v33 }
  0xca   :  { %189 = vsinq.f32 %v133_v33 }
  0xd3   :  { %v188_v37 = vpop.eup %187 }
  0xd4   :  { %v190_v38 = vpop.eup %189  ;;  %v144_v39 = vxor.u32 2147483648, %v188_v37 }
  0xd5   :  { %v141_v40 = vxor.u32 2147483648, %v190_v38 }
  0xd6   :  { %v145_v41 = vsel %vm143_vm9, %v144_v39, %v190_v38 }
  0xd7   :  { %v142_v42 = vsel %vm140_vm10, %v188_v37, %v141_v40 }
  0xd8   :  { %v146_v21 = vsel %vm139_vm11, %v142_v42, %v145_v41 }
  0xd9   :  { %v147_v43 = vsel %vm137_vm12, nan, %v146_v21 }
  0xda   :  { %148 = vst [vmem:[#allocation2] sm:$0xff] %v147_v43 }
  0xdb   :  { %153 = vsyncadd [#allocation3], 64  ;;  %s223_s1 = smov [#allocation2]  }
  0xdc   :  { %s154_s2 = sshll.u32 %s223_s1, 4  ;;  %s155_s2 = int_to_ptr.vmem [resolvable:$true] %s154_s2 }
  0xdd   :  { %s191_s17 = scalar_lea.vmem %s155_s2, 64  ;;  %s195_s18 = scalar_lea.vmem %s155_s2, 128 }
  0xde   :  { %p192_p0 = scmp.ne.s32.totalorder %s155_s2, %s191_s17  ;;  %p196_p1 = scmp.lt.s32.totalorder %s155_s2, %s155_s2 }
  0xdf   :  { %p197_p2 = scmp.lt.s32.totalorder %s195_s18, %s191_s17 }
  0xe1   :  { %p198_p3 = por %p197_p2, %p196_p1 }
  0xe3   :  { %p199_p4 = pnand %p198_p3, %p192_p0 }
  0xe5   :  { %202 = shalt.err (!%p199_p4)
}
  0xe6   :  { %s203_s21 = scalar_lea.hbm %s291_s3, 64 }
  0xe7   :  { %p204_p5 = scmp.ne.s32.totalorder %s291_s3, %s203_s21  ;;  %p207_p6 = scmp.lt.u32.totalorder %s203_s21, %s291_s3 }
  0xe9   :  { %p209_p7 = pnand %p207_p6, %p204_p5 }
  0xeb   :  { %212 = shalt.err (!%p209_p7)
}
  0xec   :  { %s224_s26 = smov 64   ;;  %s225_s27 = smov 4  }
  0xed   :  { %160 = dma.vmem_to_hbm [thread:$0]  %s155_s2, 64, %s291_s3, [#allocation3], %s224_s26, %s224_s26, %s225_s27  }
  0xee   :  { %213 = dma.done.wait [#allocation3], 128  }
  0xef   :  { %214 = vsyncadd [#allocation3], 4294967168 }
  0xf0   :  { %164 = vsyncpa [#allocation3], 1 }

</bundles_post_ra>
